<compile_context>
chip_gen: v7x
topology: tpu7x:2x2x1
jax: 0.10.0
libtpu: 0.0.40
codegen_flags: <defaults>
</compile_context>

<pallas_src>
import functools

import jax
import jax.numpy as jnp
from jax.experimental import pallas as pl
from jax.experimental.pallas import tpu as pltpu


def _round_up(x: int, m: int) -> int:
    return ((x + m - 1) // m) * m


def _cdiv(a: int, b: int) -> int:
    return -(-a // b)


def _intent_classifier_kernel(x_ref, w_ref, b_ref, o_ref):
    # x_ref: (tb, D)    activation tile (last block may be partial; OOB rows hold
    #                   garbage but their outputs are masked on store).
    # w_ref: (D, tn)    pre-transposed weight tile (resident block when tn == N_pad).
    # b_ref: (1, tn)    bias tile.
    # o_ref: (tb, tn)   sigmoid(x @ W + b) tile.
    x = x_ref[...]
    w = w_ref[...]
    if x.dtype != w.dtype:          # trace-time: cast x in VMEM only (no HBM pass)
        x = x.astype(w.dtype)
    logits = jnp.dot(x, w, preferred_element_type=jnp.float32)   # MXU, MK x KN
    logits = logits + b_ref[...]                                  # f32 epilogue (v5e-safe)
    o_ref[...] = jax.nn.sigmoid(logits).astype(o_ref.dtype)


@functools.partial(jax.jit, static_argnames=("block_b", "block_n", "compute_dtype"))
def multi_intent_classifier(x, weight, bias, *,
                            block_b: int = 512,
                            block_n: int = 512,
                            compute_dtype=None):
    """Forward pass of MultiIntentClassifier: sigmoid(x @ weight.T + bias).

    Args:
      x:      [B, D] input features.
      weight: [N, D] (PyTorch nn.Linear layout: out_features x in_features).
      bias:   [N].
      block_b: max batch tile (actual tile is a balanced split, multiple of 8/16).
      block_n: max output tile, only used if the weight does not fit resident.
      compute_dtype: optional MXU operand dtype (e.g. jnp.bfloat16 on v6e/v7x).
    Returns:
      [B, N] float32 probabilities.
    """
    B, D = x.shape
    N = weight.shape[0]

    x_itemsize = jnp.dtype(x.dtype).itemsize
    w_dtype = jnp.dtype(compute_dtype) if compute_dtype is not None else jnp.dtype(x.dtype)
    w_itemsize = w_dtype.itemsize

    # --- output (lane) axis: multiples of 128 so stores are lane-dense --------
    n_pad = _round_up(N, 128)
    # Keep the classifier weight fully resident in VMEM whenever it fits a small
    # budget (a 160x768 f32 head is ~0.5 MiB); otherwise fall back to tiling N.
    weight_resident = D * n_pad * w_itemsize <= (8 << 20)
    if weight_resident:
        tn = n_pad
    else:
        tn = min(_round_up(block_n, 128), n_pad)
        n_pad = _round_up(n_pad, tn)
    n_tiles = n_pad // tn

    # --- batch (sublane) axis: balanced tiles, >=2 when B >= 256 (v7x 2 TCs) --
    sub = 16 if x_itemsize == 2 else 8
    b_tiles = max(1, _cdiv(B, max(block_b, sub)))
    if B >= 256:
        b_tiles = max(b_tiles, 2)
    tb = min(_round_up(_cdiv(B, b_tiles), sub), _round_up(B, sub))
    b_tiles = _cdiv(B, tb)          # last block may be partial (edge block)

    # --- weight / bias prep (tiny, one-time; x itself is NOT padded) ----------
    w_t = jnp.pad(weight.astype(w_dtype).T, ((0, 0), (0, n_pad - N)))        # [D, n_pad]
    b_p = jnp.pad(bias.astype(jnp.float32), (0, n_pad - N)).reshape(1, n_pad)

    if n_tiles == 1:
        grid = (b_tiles,)
        in_specs = [
            pl.BlockSpec((tb, D), lambda i: (i, 0)),        # x tile, streamed
            pl.BlockSpec((D, n_pad), lambda i: (0, 0)),     # weight: resident
            pl.BlockSpec((1, n_pad), lambda i: (0, 0)),     # bias:   resident
        ]
        out_spec = pl.BlockSpec((tb, n_pad), lambda i: (i, 0))
        dims = ("parallel",)
    else:
        grid = (b_tiles, n_tiles)
        in_specs = [
            pl.BlockSpec((tb, D), lambda i, j: (i, 0)),
            pl.BlockSpec((D, tn), lambda i, j: (0, j)),
            pl.BlockSpec((1, tn), lambda i, j: (0, j)),
        ]
        out_spec = pl.BlockSpec((tb, tn), lambda i, j: (i, j))
        dims = ("parallel", "parallel")

    # --- VMEM budget from the actual (double-buffered) tile footprint ---------
    tile_bytes = (tb * D * x_itemsize       # x tile
                  + D * tn * w_itemsize     # weight tile
                  + tn * 4                  # bias tile
                  + tb * tn * 4)            # output tile
    vmem_limit = min(max(2 * tile_bytes + (4 << 20), 16 << 20), 64 << 20)

    cost = pl.CostEstimate(
        flops=2 * B * D * N,
        transcendentals=B * N,
        bytes_accessed=(B * D * x_itemsize
                        + D * n_pad * w_itemsize * (1 if n_tiles == 1 else b_tiles)
                        + n_pad * 4
                        + B * n_pad * 4),
    )

    out = pl.pallas_call(
        _intent_classifier_kernel,
        out_shape=jax.ShapeDtypeStruct((B, n_pad), jnp.float32),
        grid_spec=pltpu.PrefetchScalarGridSpec(
            num_scalar_prefetch=0,
            grid=grid,
            in_specs=in_specs,
            out_specs=out_spec,
        ),
        compiler_params=pltpu.CompilerParams(
            dimension_semantics=dims,
            vmem_limit_bytes=vmem_limit,
        ),
        cost_estimate=cost,
    )(x, w_t, b_p)

    return out[:, :N]


if __name__ == "__main__":
    key = jax.random.PRNGKey(0)
    k_x, k_w, k_b, k_x2, k_w2, k_b2 = jax.random.split(key, 6)

    # --- shapes consistent with the module (small) ----------------------------
    batch, input_dim, num_intent_labels = 8, 32, 16

    x = jax.random.normal(k_x, (batch, input_dim), dtype=jnp.float32)
    # reset_params(): nn.init.uniform_ -> U(0, 1) for both weight and bias.
    weight = jax.random.uniform(k_w, (num_intent_labels, input_dim), dtype=jnp.float32)
    bias = jax.random.uniform(k_b, (num_intent_labels,), dtype=jnp.float32)

    out = jax.block_until_ready(multi_intent_classifier(x, weight, bias))
    ref = jax.nn.sigmoid(x @ weight.T + bias)
    assert out.shape == (batch, num_intent_labels)
    assert jnp.allclose(out, ref, atol=1e-5, rtol=1e-5)

    # --- non-aligned shape: multi batch tile + partial edge block + N padding -
    B2, D2, N2 = 300, 48, 160
    x2 = jax.random.normal(k_x2, (B2, D2), dtype=jnp.float32)
    w2 = jax.random.uniform(k_w2, (N2, D2), dtype=jnp.float32)
    b2 = jax.random.uniform(k_b2, (N2,), dtype=jnp.float32)
    out2 = jax.block_until_ready(multi_intent_classifier(x2, w2, b2))
    ref2 = jax.nn.sigmoid(x2 @ w2.T + b2)
    assert out2.shape == (B2, N2)
    assert jnp.allclose(out2, ref2, atol=1e-5, rtol=1e-5)

    # --- bf16 weight path (v6e/v7x MXU), x cast in-kernel, f32 accum/epilogue -
    out_bf16 = jax.block_until_ready(
        multi_intent_classifier(x, weight, bias, compute_dtype=jnp.bfloat16))
    assert jnp.allclose(out_bf16, ref, atol=5e-2)

    print("KERNEL_OK")
</pallas_src>

<mosaic_0001>
module attributes {stable_mosaic.version = 11 : i64} {
  func.func @_intent_classifier_kernel(%arg0: i32, %arg1: memref<8x32xf32, #tpu.memory_space<vmem>>, %arg2: memref<32x128xf32, #tpu.memory_space<vmem>>, %arg3: memref<1x128xf32, #tpu.memory_space<vmem>>, %arg4: memref<8x128xf32, #tpu.memory_space<vmem>>) attributes {dimension_semantics = [#tpu.dimension_semantics<parallel>], iteration_bounds = array<i64: 1>, scalar_prefetch = 0 : i64, scratch_operands = 0 : i64, tpu.core_type = #tpu.core_type<tc>, window_params = [{transform_indices = @transform_0, window_bounds = array<i64: 8, 32>}, {pipeline_mode = #tpu.pipeline_mode<synchronous>, transform_indices = @transform_1, window_bounds = array<i64: 32, 128>}, {pipeline_mode = #tpu.pipeline_mode<synchronous>, transform_indices = @transform_2, window_bounds = array<i64: 1, 128>}, {transform_indices = @transform_3, window_bounds = array<i64: 8, 128>}]} {
    %c0 = arith.constant 0 : index
    %c0_0 = arith.constant 0 : index
    %0 = vector.load %arg1[%c0, %c0_0] : memref<8x32xf32, #tpu.memory_space<vmem>>, vector<8x32xf32>
    %c0_1 = arith.constant 0 : index
    %c0_2 = arith.constant 0 : index
    %1 = vector.load %arg2[%c0_1, %c0_2] : memref<32x128xf32, #tpu.memory_space<vmem>>, vector<32x128xf32>
    %cst = arith.constant dense<0.000000e+00> : vector<8x128xf32>
    %2 = tpu.matmul %0, %1, %cst {dimension_numbers = #tpu.dot_dimension_numbers<[1], [0], [0], [1], [0, 0, 1, 1], [], []>} : vector<8x32xf32>, vector<32x128xf32>, vector<8x128xf32> -> vector<8x128xf32>
    %c0_3 = arith.constant 0 : index
    %c0_4 = arith.constant 0 : index
    %3 = vector.load %arg3[%c0_3, %c0_4] : memref<1x128xf32, #tpu.memory_space<vmem>>, vector<1x128xf32>
    %4 = vector.broadcast %3 : vector<1x128xf32> to vector<8x128xf32>
    %5 = arith.addf %2, %4 : vector<8x128xf32>
    %6 = arith.negf %5 : vector<8x128xf32>
    %7 = math.exp %6 : vector<8x128xf32>
    %cst_5 = arith.constant 1.000000e+00 : f32
    %8 = vector.broadcast %cst_5 : f32 to vector<8x128xf32>
    %9 = arith.addf %8, %7 : vector<8x128xf32>
    %10 = arith.divf %8, %9 : vector<8x128xf32>
    %c0_6 = arith.constant 0 : index
    %c0_7 = arith.constant 0 : index
    %11 = vector.load %arg4[%c0_6, %c0_7] : memref<8x128xf32, #tpu.memory_space<vmem>>, vector<8x128xf32>
    tpu.vector_store %arg4[%c0_6, %c0_7], %10 {strides = array<i32>} : memref<8x128xf32, #tpu.memory_space<vmem>>, vector<8x128xf32>,
    return
  }
  func.func @transform_0(%arg0: i32) -> (i32, i32) {
    %c0_i32 = arith.constant 0 : i32
    %c0_i32_0 = arith.constant 0 : i32
    return %arg0, %c0_i32 : i32, i32
  }
  func.func @transform_1(%arg0: i32) -> (i32, i32) {
    %c0_i32 = arith.constant 0 : i32
    %c0_i32_0 = arith.constant 0 : i32
    %c0_i32_1 = arith.constant 0 : i32
    return %c0_i32, %c0_i32_0 : i32, i32
  }
  func.func @transform_2(%arg0: i32) -> (i32, i32) {
    %c0_i32 = arith.constant 0 : i32
    %c0_i32_0 = arith.constant 0 : i32
    %c0_i32_1 = arith.constant 0 : i32
    return %c0_i32, %c0_i32_0 : i32, i32
  }
  func.func @transform_3(%arg0: i32) -> (i32, i32) {
    %c0_i32 = arith.constant 0 : i32
    %c0_i32_0 = arith.constant 0 : i32
    return %arg0, %c0_i32 : i32, i32
  }
}

</mosaic_0001>

<bundles_post_ra>
// kernel: multi_intent_classifier.1
= control target key start
LH: loop header
LB: loop body
LE: loop exit
PB: predicated region body
PF: predicated region fallthrough
CT: control target
= control target key end

     0   :  { %v179_v3 = vmov 0.0|0.0   ;;  %vm180_vm0 = vmmov 0   ;;  %v181_v6 = vmov 0.0   ;;  %s233_s0 = inlined_call_operand.vmem [shape: f32[8,32], index: 0, kind: input, shape index: {}]   ;;  %s234_s1 = inlined_call_operand.vmem [shape: f32[32,128], index: 1, kind: input, shape index: {}]   ;;  %s235_s2 = inlined_call_operand.vmem [shape: f32[1,128], index: 2, kind: input, shape index: {}]   ;;  %s236_s3 = inlined_call_operand.hbm [shape: f32[8,128], index: 3, kind: output, shape index: {}]  }
   0x1   :  { %v16_v0 = vld [vmem:[%s234_s1] sm:$0xff]  ;;  %v17_v1 = vld [vmem:[%s234_s1 + $0x8] sm:$0xff]  ;;  %v18_v2 = vld [vmem:[%s234_s1 + $0x10] sm:$0xff]  ;;  %141 = vmatprep.subr.bf16.mxu0 %v179_v3  ;;  %138 = vmatprep.mubr.msk.f32.mxu0 %vm180_vm0, %v181_v6 }
   0x2   :  { %v142_v4 = vpack.c.bf16 %v17_v1, %v16_v0  ;;  %v19_v5 = vld [vmem:[%s234_s1 + $0x18] sm:$0xff] }
   0x3   :  { %8 = vsyncpa [#allocation3], 0  ;;  %v145_v7 = vpack.c.bf16 %v19_v5, %v18_v2  ;;  %v15_v8 = vld [vmem:[%s233_s0] sm:$0xff]  ;;  %vm27_vm1 = vcmask 261120   ;;  %s182_s1 = smov [#allocation2]  }
   0x4   :  { %143 = vmatpush3.bf16.msra.mxu0 %v142_v4  ;;  %v122_v9 = vld [vmem:[%s235_s2] ss:$0 sm:$0xff]  ;;  %s114_s24 = sshll.u32 %s182_s1, 4  ;;  %s115_s24 = int_to_ptr.vmem [resolvable:$true] %s114_s24 }
   0x5   :  { %144 = vmatprep.subr.bf16.mxu0 %v179_v3  ;;  %s155_s0 = scalar_lea.vmem %s115_s24, 128  ;;  %p160_p1 = scmp.lt.s32.totalorder %s115_s24, %s115_s24 }
   0x6   :  { %p156_p0 = scmp.ne.s32.totalorder %s115_s24, %s155_s0  ;;  %p161_p2 = scmp.lt.s32.totalorder %s155_s0, %s155_s0 }
   0x8   :  { %146 = vmatpush3.bf16.msra.mxu0 %v145_v7  ;;  %p162_p3 = por %p161_p2, %p160_p1 }
   0xa   :  { %p163_p4 = pnand %p162_p3, %p156_p0 }
   0xb   :  { %139 = vmatmul.mubr.msk.f32.vlgmr.msra.gmra.mrb[0].mxu0 %vm27_vm1, %v15_v8 }
  0xde   :  { %v97_v10 = vpop.f32.mrb[0].mxu0 }
  0xdf   :  { %v98_v11 = vadd.f32 %v122_v9, %v97_v10  ;;  %v140_v12 = vpop.f32.mrb[1].mxu0 }
  0xe1   :  { %v124_v13 = vmul.f32 -1.442695, %v98_v11 }
  0xe3   :  { %151 = vpow2.f32 %v124_v13 }
  0xed   :  { %v152_v14 = vpop.eup %151 }
  0xee   :  { %v104_v15 = vadd.f32 1.0, %v152_v14 }
  0xf0   :  { %153 = vrcp.f32 %v104_v15 }
  0xfa   :  { %v154_v16 = vpop.eup %153 }
  0xfb   :  { %107 = vst [vmem:[#allocation2] sm:$0xff] %v154_v16 }
  0xfc   :  { %166 = shalt.err (!%p163_p4)
}
  0xfd   :  { %s167_s26 = scalar_lea.hbm %s236_s3, 128 }
  0xfe   :  { %p168_p5 = scmp.ne.s32.totalorder %s236_s3, %s167_s26  ;;  %p171_p6 = scmp.lt.u32.totalorder %s167_s26, %s236_s3 }
 0x100   :  { %p173_p7 = pnand %p171_p6, %p168_p5 }
 0x102   :  { %176 = shalt.err (!%p173_p7)
}
 0x103   :  { %117 = dma.vmem_to_hbm [thread:$0]  %s115_s24, 128, %s236_s3, [#allocation3]  }
 0x104   :  { %177 = dma.done.wait [#allocation3], 128  }
 0x105   :  { %178 = vsyncadd [#allocation3], 4294967168 }
 0x106   :  { %121 = vsyncpa [#allocation3], 1 }

</bundles_post_ra>
